<compile_context>
chip_gen: v7x
topology: tpu7x:2x2x1
jax: 0.10.0
libtpu: 0.0.40
codegen_flags: <defaults>
</compile_context>

<pallas_src>
import functools

import jax
import jax.numpy as jnp
from jax.experimental import pallas as pl
from jax.experimental.pallas import tpu as pltpu


def _vocab_emb_gather_kernel(
    ids_smem,       # (N_pad,)      int32  full id array in SMEM (scalar prefetch)
    ids_tile_ref,   # (tn, 1)       int32  id tile in VMEM (for the vectorized mask)
    table_hbm,      # (V_local, E)  f32    local table, left in HBM (pl.ANY)
    out_ref,        # (tn, E)       f32    output tile
    gather_buf,     # (tn, E)       f32    VMEM scratch gather buffer
    copy_sems,      # (tn,)                DMA semaphores
    *,
    lower_bound: int,
    tn: int,
):
    v_local = table_hbm.shape[0]
    base = pl.program_id(0) * tn

    # Issue one row-gather DMA per token in this tile (HBM -> VMEM).
    # Ids outside this rank's shard are clipped so the DMA source is always valid;
    # their rows are masked to zero afterwards.
    for t in range(tn):
        tok = ids_smem[base + t]
        row = jnp.clip(tok - lower_bound, 0, v_local - 1)
        pltpu.make_async_copy(
            table_hbm.at[pl.ds(row, 1)],
            gather_buf.at[pl.ds(t, 1)],
            copy_sems.at[t],
        ).start()

    # Wait for all row gathers of this tile.
    for t in range(tn):
        pltpu.make_async_copy(
            table_hbm.at[pl.ds(0, 1)],
            gather_buf.at[pl.ds(t, 1)],
            copy_sems.at[t],
        ).wait()

    # Vectorized out-of-shard masking.
    local_ids = ids_tile_ref[...] - lower_bound                  # (tn, 1) int32
    in_range = (local_ids >= 0) & (local_ids < v_local)          # (tn, 1) bool
    out_ref[...] = jnp.where(in_range, gather_buf[...], 0).astype(out_ref.dtype)


def parallel_vocab_embedding(input_ids, table, *, rank, num_ids_per_rank, tn=8):
    """Forward pass of ParallelVocabEmbedding for a single rank (Pallas TPU)."""
    B, S = input_ids.shape
    V_local, E = table.shape
    assert V_local == num_ids_per_rank
    assert tn % 8 == 0, "token tile must be a multiple of 8 (sublane granularity)"

    lower_bound = rank * num_ids_per_rank

    # Flatten tokens and pad up to a multiple of the token tile with an always
    # out-of-range sentinel id (-1), so any (batch, seq) shape is supported.
    N = B * S
    n_tiles = pl.cdiv(N, tn)
    n_pad = n_tiles * tn
    ids_flat = input_ids.reshape(-1).astype(jnp.int32)
    if n_pad != N:
        ids_flat = jnp.concatenate(
            [ids_flat, jnp.full((n_pad - N,), -1, dtype=jnp.int32)]
        )
    ids_col = ids_flat.reshape(n_pad, 1)

    kernel = functools.partial(
        _vocab_emb_gather_kernel, lower_bound=lower_bound, tn=tn
    )

    grid_spec = pltpu.PrefetchScalarGridSpec(
        num_scalar_prefetch=1,                      # ids_flat -> SMEM, drives the gather
        grid=(n_tiles,),
        in_specs=[
            pl.BlockSpec((tn, 1), lambda i, ids: (i, 0)),   # id tile (for the mask)
            pl.BlockSpec(memory_space=pl.ANY),              # table stays in HBM
        ],
        out_specs=pl.BlockSpec((tn, E), lambda i, ids: (i, 0)),
        scratch_shapes=[
            pltpu.VMEM((tn, E), table.dtype),               # gather buffer
            pltpu.SemaphoreType.DMA((tn,)),                 # one sem per gathered row
        ],
    )

    out_flat = pl.pallas_call(
        kernel,
        out_shape=jax.ShapeDtypeStruct((n_pad, E), table.dtype),
        grid_spec=grid_spec,
        compiler_params=pltpu.CompilerParams(
            dimension_semantics=("parallel",),
        ),
    )(ids_flat, ids_col, table)

    return out_flat[:N].reshape(B, S, E)


def _reference(input_ids, table, rank, num_ids_per_rank):
    lower = rank * num_ids_per_rank
    upper = (rank + 1) * num_ids_per_rank
    in_range = (input_ids >= lower) & (input_ids < upper)
    gathered = table[jnp.clip(input_ids - lower, 0, num_ids_per_rank - 1)]
    return jnp.where(in_range[..., None], gathered, 0.0)


if __name__ == "__main__":
    # Module configuration (small, consistent with the PyTorch module)
    vocab_size = 32
    emb_size = 32
    world_size = 2
    init_mean = 0.0
    init_std = 1.0
    init_base_seed = 42
    num_ids_per_rank = vocab_size // world_size  # 16

    ok = True

    # --- case 1: rank 0, B=2, S=8 (N divisible by the token tile) ---
    rank = 0
    table_key = jax.random.PRNGKey(init_base_seed + rank)
    table0 = init_mean + init_std * jax.random.normal(
        table_key, (num_ids_per_rank, emb_size), jnp.float32
    )
    ids_key = jax.random.PRNGKey(0)
    input_ids0 = jax.random.randint(ids_key, (2, 8), 0, vocab_size, dtype=jnp.int32)

    out0 = parallel_vocab_embedding(
        input_ids0, table0, rank=rank, num_ids_per_rank=num_ids_per_rank, tn=8
    )
    out0 = jax.block_until_ready(out0)
    ref0 = _reference(input_ids0, table0, rank, num_ids_per_rank)
    ok &= out0.shape == (2, 8, emb_size)
    ok &= out0.dtype == jnp.float32
    ok &= bool(jnp.allclose(out0, ref0, atol=1e-6))

    # --- case 2: rank 1 (nonzero lower_bound), B=2, S=5 (exercises padding path) ---
    rank = 1
    table_key = jax.random.PRNGKey(init_base_seed + rank)
    table1 = init_mean + init_std * jax.random.normal(
        table_key, (num_ids_per_rank, emb_size), jnp.float32
    )
    ids_key2 = jax.random.PRNGKey(0)
    input_ids1 = jax.random.randint(ids_key2, (2, 5), 0, vocab_size, dtype=jnp.int32)

    out1 = parallel_vocab_embedding(
        input_ids1, table1, rank=rank, num_ids_per_rank=num_ids_per_rank, tn=8
    )
    out1 = jax.block_until_ready(out1)
    ref1 = _reference(input_ids1, table1, rank, num_ids_per_rank)
    ok &= out1.shape == (2, 5, emb_size)
    ok &= bool(jnp.allclose(out1, ref1, atol=1e-6))

    assert ok
    print("KERNEL_OK")
</pallas_src>

<mosaic_0001>
module attributes {stable_mosaic.version = 11 : i64} {
  func.func @_vocab_emb_gather_kernel(%arg0: i32, %arg1: memref<16xi32, #tpu.memory_space<smem>>, %arg2: memref<8x1xi32, #tpu.memory_space<vmem>>, %arg3: memref<16x32xf32, #tpu.memory_space<any>>, %arg4: memref<8x32xf32, #tpu.memory_space<vmem>>, %arg5: memref<8x32xf32, #tpu.memory_space<vmem>>, %arg6: memref<8x!tpu.dma_semaphore, #tpu.memory_space<semaphore_mem>>) attributes {dimension_semantics = [#tpu.dimension_semantics<parallel>], iteration_bounds = array<i64: 2>, scalar_prefetch = 1 : i64, scratch_operands = 2 : i64, tpu.core_type = #tpu.core_type<tc>, window_params = [{transform_indices = @transform_0, window_bounds = array<i64: 8, 1>}, {}, {transform_indices = @transform_2, window_bounds = array<i64: 8, 32>}]} {
    %c8_i32 = arith.constant 8 : i32
    %0 = arith.muli %arg0, %c8_i32 : i32
    %c0_i32 = arith.constant 0 : i32
    %1 = arith.addi %0, %c0_i32 : i32
    %2 = arith.index_cast %1 : i32 to index
    %3 = memref.load %arg1[%2] : memref<16xi32, #tpu.memory_space<smem>>
    %c0_i32_0 = arith.constant 0 : i32
    %4 = arith.subi %3, %c0_i32_0 : i32
    %c0_i32_1 = arith.constant 0 : i32
    %c15_i32 = arith.constant 15 : i32
    %5 = arith.maxsi %c0_i32_1, %4 : i32
    %6 = arith.minsi %c15_i32, %5 : i32
    %c0_i32_2 = arith.constant 0 : i32
    %c0_i32_3 = arith.constant 0 : i32
    %7 = tpu.memref_slice %arg3[%6, %c0_i32_3] : memref<16x32xf32, #tpu.memory_space<any>> -> memref<1x32xf32, #tpu.memory_space<any>>
    %c0_i32_4 = arith.constant 0 : i32
    %c0_i32_5 = arith.constant 0 : i32
    %8 = tpu.memref_slice %arg5[%c0_i32_4, %c0_i32_5] : memref<8x32xf32, #tpu.memory_space<vmem>> -> memref<1x32xf32, #tpu.memory_space<vmem>>
    %9 = tpu.memref_slice %arg6[%c0_i32_2] : memref<8x!tpu.dma_semaphore, #tpu.memory_space<semaphore_mem>> -> memref<1x!tpu.dma_semaphore, #tpu.memory_space<semaphore_mem>>
    %10 = tpu.memref_squeeze %9 : memref<1x!tpu.dma_semaphore, #tpu.memory_space<semaphore_mem>> -> memref<!tpu.dma_semaphore, #tpu.memory_space<semaphore_mem>>
    tpu.enqueue_dma source(%7 : memref<1x32xf32, #tpu.memory_space<any>>) target(%8 : memref<1x32xf32, #tpu.memory_space<vmem>>) target_semaphore(%10 : memref<!tpu.dma_semaphore, #tpu.memory_space<semaphore_mem>>)
    %c1_i32 = arith.constant 1 : i32
    %11 = arith.addi %0, %c1_i32 : i32
    %12 = arith.index_cast %11 : i32 to index
    %13 = memref.load %arg1[%12] : memref<16xi32, #tpu.memory_space<smem>>
    %c0_i32_6 = arith.constant 0 : i32
    %14 = arith.subi %13, %c0_i32_6 : i32
    %c0_i32_7 = arith.constant 0 : i32
    %c15_i32_8 = arith.constant 15 : i32
    %15 = arith.maxsi %c0_i32_7, %14 : i32
    %16 = arith.minsi %c15_i32_8, %15 : i32
    %c1_i32_9 = arith.constant 1 : i32
    %c0_i32_10 = arith.constant 0 : i32
    %17 = tpu.memref_slice %arg3[%16, %c0_i32_10] : memref<16x32xf32, #tpu.memory_space<any>> -> memref<1x32xf32, #tpu.memory_space<any>>
    %c1_i32_11 = arith.constant 1 : i32
    %c0_i32_12 = arith.constant 0 : i32
    %18 = tpu.memref_slice %arg5[%c1_i32_11, %c0_i32_12] : memref<8x32xf32, #tpu.memory_space<vmem>> -> memref<1x32xf32, #tpu.memory_space<vmem>>
    %19 = tpu.memref_slice %arg6[%c1_i32_9] : memref<8x!tpu.dma_semaphore, #tpu.memory_space<semaphore_mem>> -> memref<1x!tpu.dma_semaphore, #tpu.memory_space<semaphore_mem>>
    %20 = tpu.memref_squeeze %19 : memref<1x!tpu.dma_semaphore, #tpu.memory_space<semaphore_mem>> -> memref<!tpu.dma_semaphore, #tpu.memory_space<semaphore_mem>>
    tpu.enqueue_dma source(%17 : memref<1x32xf32, #tpu.memory_space<any>>) target(%18 : memref<1x32xf32, #tpu.memory_space<vmem>>) target_semaphore(%20 : memref<!tpu.dma_semaphore, #tpu.memory_space<semaphore_mem>>)
    %c2_i32 = arith.constant 2 : i32
    %21 = arith.addi %0, %c2_i32 : i32
    %22 = arith.index_cast %21 : i32 to index
    %23 = memref.load %arg1[%22] : memref<16xi32, #tpu.memory_space<smem>>
    %c0_i32_13 = arith.constant 0 : i32
    %24 = arith.subi %23, %c0_i32_13 : i32
    %c0_i32_14 = arith.constant 0 : i32
    %c15_i32_15 = arith.constant 15 : i32
    %25 = arith.maxsi %c0_i32_14, %24 : i32
    %26 = arith.minsi %c15_i32_15, %25 : i32
    %c2_i32_16 = arith.constant 2 : i32
    %c0_i32_17 = arith.constant 0 : i32
    %27 = tpu.memref_slice %arg3[%26, %c0_i32_17] : memref<16x32xf32, #tpu.memory_space<any>> -> memref<1x32xf32, #tpu.memory_space<any>>
    %c2_i32_18 = arith.constant 2 : i32
    %c0_i32_19 = arith.constant 0 : i32
    %28 = tpu.memref_slice %arg5[%c2_i32_18, %c0_i32_19] : memref<8x32xf32, #tpu.memory_space<vmem>> -> memref<1x32xf32, #tpu.memory_space<vmem>>
    %29 = tpu.memref_slice %arg6[%c2_i32_16] : memref<8x!tpu.dma_semaphore, #tpu.memory_space<semaphore_mem>> -> memref<1x!tpu.dma_semaphore, #tpu.memory_space<semaphore_mem>>
    %30 = tpu.memref_squeeze %29 : memref<1x!tpu.dma_semaphore, #tpu.memory_space<semaphore_mem>> -> memref<!tpu.dma_semaphore, #tpu.memory_space<semaphore_mem>>
    tpu.enqueue_dma source(%27 : memref<1x32xf32, #tpu.memory_space<any>>) target(%28 : memref<1x32xf32, #tpu.memory_space<vmem>>) target_semaphore(%30 : memref<!tpu.dma_semaphore, #tpu.memory_space<semaphore_mem>>)
    %c3_i32 = arith.constant 3 : i32
    %31 = arith.addi %0, %c3_i32 : i32
    %32 = arith.index_cast %31 : i32 to index
    %33 = memref.load %arg1[%32] : memref<16xi32, #tpu.memory_space<smem>>
    %c0_i32_20 = arith.constant 0 : i32
    %34 = arith.subi %33, %c0_i32_20 : i32
    %c0_i32_21 = arith.constant 0 : i32
    %c15_i32_22 = arith.constant 15 : i32
    %35 = arith.maxsi %c0_i32_21, %34 : i32
    %36 = arith.minsi %c15_i32_22, %35 : i32
    %c3_i32_23 = arith.constant 3 : i32
    %c0_i32_24 = arith.constant 0 : i32
    %37 = tpu.memref_slice %arg3[%36, %c0_i32_24] : memref<16x32xf32, #tpu.memory_space<any>> -> memref<1x32xf32, #tpu.memory_space<any>>
    %c3_i32_25 = arith.constant 3 : i32
    %c0_i32_26 = arith.constant 0 : i32
    %38 = tpu.memref_slice %arg5[%c3_i32_25, %c0_i32_26] : memref<8x32xf32, #tpu.memory_space<vmem>> -> memref<1x32xf32, #tpu.memory_space<vmem>>
    %39 = tpu.memref_slice %arg6[%c3_i32_23] : memref<8x!tpu.dma_semaphore, #tpu.memory_space<semaphore_mem>> -> memref<1x!tpu.dma_semaphore, #tpu.memory_space<semaphore_mem>>
    %40 = tpu.memref_squeeze %39 : memref<1x!tpu.dma_semaphore, #tpu.memory_space<semaphore_mem>> -> memref<!tpu.dma_semaphore, #tpu.memory_space<semaphore_mem>>
    tpu.enqueue_dma source(%37 : memref<1x32xf32, #tpu.memory_space<any>>) target(%38 : memref<1x32xf32, #tpu.memory_space<vmem>>) target_semaphore(%40 : memref<!tpu.dma_semaphore, #tpu.memory_space<semaphore_mem>>)
    %c4_i32 = arith.constant 4 : i32
    %41 = arith.addi %0, %c4_i32 : i32
    %42 = arith.index_cast %41 : i32 to index
    %43 = memref.load %arg1[%42] : memref<16xi32, #tpu.memory_space<smem>>
    %c0_i32_27 = arith.constant 0 : i32
    %44 = arith.subi %43, %c0_i32_27 : i32
    %c0_i32_28 = arith.constant 0 : i32
    %c15_i32_29 = arith.constant 15 : i32
    %45 = arith.maxsi %c0_i32_28, %44 : i32
    %46 = arith.minsi %c15_i32_29, %45 : i32
    %c4_i32_30 = arith.constant 4 : i32
    %c0_i32_31 = arith.constant 0 : i32
    %47 = tpu.memref_slice %arg3[%46, %c0_i32_31] : memref<16x32xf32, #tpu.memory_space<any>> -> memref<1x32xf32, #tpu.memory_space<any>>
    %c4_i32_32 = arith.constant 4 : i32
    %c0_i32_33 = arith.constant 0 : i32
    %48 = tpu.memref_slice %arg5[%c4_i32_32, %c0_i32_33] : memref<8x32xf32, #tpu.memory_space<vmem>> -> memref<1x32xf32, #tpu.memory_space<vmem>>
    %49 = tpu.memref_slice %arg6[%c4_i32_30] : memref<8x!tpu.dma_semaphore, #tpu.memory_space<semaphore_mem>> -> memref<1x!tpu.dma_semaphore, #tpu.memory_space<semaphore_mem>>
    %50 = tpu.memref_squeeze %49 : memref<1x!tpu.dma_semaphore, #tpu.memory_space<semaphore_mem>> -> memref<!tpu.dma_semaphore, #tpu.memory_space<semaphore_mem>>
    tpu.enqueue_dma source(%47 : memref<1x32xf32, #tpu.memory_space<any>>) target(%48 : memref<1x32xf32, #tpu.memory_space<vmem>>) target_semaphore(%50 : memref<!tpu.dma_semaphore, #tpu.memory_space<semaphore_mem>>)
    %c5_i32 = arith.constant 5 : i32
    %51 = arith.addi %0, %c5_i32 : i32
    %52 = arith.index_cast %51 : i32 to index
    %53 = memref.load %arg1[%52] : memref<16xi32, #tpu.memory_space<smem>>
    %c0_i32_34 = arith.constant 0 : i32
    %54 = arith.subi %53, %c0_i32_34 : i32
    %c0_i32_35 = arith.constant 0 : i32
    %c15_i32_36 = arith.constant 15 : i32
    %55 = arith.maxsi %c0_i32_35, %54 : i32
    %56 = arith.minsi %c15_i32_36, %55 : i32
    %c5_i32_37 = arith.constant 5 : i32
    %c0_i32_38 = arith.constant 0 : i32
    %57 = tpu.memref_slice %arg3[%56, %c0_i32_38] : memref<16x32xf32, #tpu.memory_space<any>> -> memref<1x32xf32, #tpu.memory_space<any>>
    %c5_i32_39 = arith.constant 5 : i32
    %c0_i32_40 = arith.constant 0 : i32
    %58 = tpu.memref_slice %arg5[%c5_i32_39, %c0_i32_40] : memref<8x32xf32, #tpu.memory_space<vmem>> -> memref<1x32xf32, #tpu.memory_space<vmem>>
    %59 = tpu.memref_slice %arg6[%c5_i32_37] : memref<8x!tpu.dma_semaphore, #tpu.memory_space<semaphore_mem>> -> memref<1x!tpu.dma_semaphore, #tpu.memory_space<semaphore_mem>>
    %60 = tpu.memref_squeeze %59 : memref<1x!tpu.dma_semaphore, #tpu.memory_space<semaphore_mem>> -> memref<!tpu.dma_semaphore, #tpu.memory_space<semaphore_mem>>
    tpu.enqueue_dma source(%57 : memref<1x32xf32, #tpu.memory_space<any>>) target(%58 : memref<1x32xf32, #tpu.memory_space<vmem>>) target_semaphore(%60 : memref<!tpu.dma_semaphore, #tpu.memory_space<semaphore_mem>>)
    %c6_i32 = arith.constant 6 : i32
    %61 = arith.addi %0, %c6_i32 : i32
    %62 = arith.index_cast %61 : i32 to index
    %63 = memref.load %arg1[%62] : memref<16xi32, #tpu.memory_space<smem>>
    %c0_i32_41 = arith.constant 0 : i32
    %64 = arith.subi %63, %c0_i32_41 : i32
    %c0_i32_42 = arith.constant 0 : i32
    %c15_i32_43 = arith.constant 15 : i32
    %65 = arith.maxsi %c0_i32_42, %64 : i32
    %66 = arith.minsi %c15_i32_43, %65 : i32
    %c6_i32_44 = arith.constant 6 : i32
    %c0_i32_45 = arith.constant 0 : i32
    %67 = tpu.memref_slice %arg3[%66, %c0_i32_45] : memref<16x32xf32, #tpu.memory_space<any>> -> memref<1x32xf32, #tpu.memory_space<any>>
    %c6_i32_46 = arith.constant 6 : i32
    %c0_i32_47 = arith.constant 0 : i32
    %68 = tpu.memref_slice %arg5[%c6_i32_46, %c0_i32_47] : memref<8x32xf32, #tpu.memory_space<vmem>> -> memref<1x32xf32, #tpu.memory_space<vmem>>
    %69 = tpu.memref_slice %arg6[%c6_i32_44] : memref<8x!tpu.dma_semaphore, #tpu.memory_space<semaphore_mem>> -> memref<1x!tpu.dma_semaphore, #tpu.memory_space<semaphore_mem>>
    %70 = tpu.memref_squeeze %69 : memref<1x!tpu.dma_semaphore, #tpu.memory_space<semaphore_mem>> -> memref<!tpu.dma_semaphore, #tpu.memory_space<semaphore_mem>>
    tpu.enqueue_dma source(%67 : memref<1x32xf32, #tpu.memory_space<any>>) target(%68 : memref<1x32xf32, #tpu.memory_space<vmem>>) target_semaphore(%70 : memref<!tpu.dma_semaphore, #tpu.memory_space<semaphore_mem>>)
    %c7_i32 = arith.constant 7 : i32
    %71 = arith.addi %0, %c7_i32 : i32
    %72 = arith.index_cast %71 : i32 to index
    %73 = memref.load %arg1[%72] : memref<16xi32, #tpu.memory_space<smem>>
    %c0_i32_48 = arith.constant 0 : i32
    %74 = arith.subi %73, %c0_i32_48 : i32
    %c0_i32_49 = arith.constant 0 : i32
    %c15_i32_50 = arith.constant 15 : i32
    %75 = arith.maxsi %c0_i32_49, %74 : i32
    %76 = arith.minsi %c15_i32_50, %75 : i32
    %c7_i32_51 = arith.constant 7 : i32
    %c0_i32_52 = arith.constant 0 : i32
    %77 = tpu.memref_slice %arg3[%76, %c0_i32_52] : memref<16x32xf32, #tpu.memory_space<any>> -> memref<1x32xf32, #tpu.memory_space<any>>
    %c7_i32_53 = arith.constant 7 : i32
    %c0_i32_54 = arith.constant 0 : i32
    %78 = tpu.memref_slice %arg5[%c7_i32_53, %c0_i32_54] : memref<8x32xf32, #tpu.memory_space<vmem>> -> memref<1x32xf32, #tpu.memory_space<vmem>>
    %79 = tpu.memref_slice %arg6[%c7_i32_51] : memref<8x!tpu.dma_semaphore, #tpu.memory_space<semaphore_mem>> -> memref<1x!tpu.dma_semaphore, #tpu.memory_space<semaphore_mem>>
    %80 = tpu.memref_squeeze %79 : memref<1x!tpu.dma_semaphore, #tpu.memory_space<semaphore_mem>> -> memref<!tpu.dma_semaphore, #tpu.memory_space<semaphore_mem>>
    tpu.enqueue_dma source(%77 : memref<1x32xf32, #tpu.memory_space<any>>) target(%78 : memref<1x32xf32, #tpu.memory_space<vmem>>) target_semaphore(%80 : memref<!tpu.dma_semaphore, #tpu.memory_space<semaphore_mem>>)
    %c0_i32_55 = arith.constant 0 : i32
    %c0_i32_56 = arith.constant 0 : i32
    %c0_i32_57 = arith.constant 0 : i32
    %81 = tpu.memref_slice %arg3[%c0_i32_56, %c0_i32_57] : memref<16x32xf32, #tpu.memory_space<any>> -> memref<1x32xf32, #tpu.memory_space<any>>
    %c0_i32_58 = arith.constant 0 : i32
    %c0_i32_59 = arith.constant 0 : i32
    %82 = tpu.memref_slice %arg5[%c0_i32_58, %c0_i32_59] : memref<8x32xf32, #tpu.memory_space<vmem>> -> memref<1x32xf32, #tpu.memory_space<vmem>>
    %83 = tpu.memref_slice %arg6[%c0_i32_55] : memref<8x!tpu.dma_semaphore, #tpu.memory_space<semaphore_mem>> -> memref<1x!tpu.dma_semaphore, #tpu.memory_space<semaphore_mem>>
    %84 = tpu.memref_squeeze %83 : memref<1x!tpu.dma_semaphore, #tpu.memory_space<semaphore_mem>> -> memref<!tpu.dma_semaphore, #tpu.memory_space<semaphore_mem>>
    tpu.wait_dma2 semaphore(%84 : memref<!tpu.dma_semaphore, #tpu.memory_space<semaphore_mem>>) src(%81 : memref<1x32xf32, #tpu.memory_space<any>>) dst(%82 : memref<1x32xf32, #tpu.memory_space<vmem>>)
    %c1_i32_60 = arith.constant 1 : i32
    %c0_i32_61 = arith.constant 0 : i32
    %c0_i32_62 = arith.constant 0 : i32
    %85 = tpu.memref_slice %arg3[%c0_i32_61, %c0_i32_62] : memref<16x32xf32, #tpu.memory_space<any>> -> memref<1x32xf32, #tpu.memory_space<any>>
    %c1_i32_63 = arith.constant 1 : i32
    %c0_i32_64 = arith.constant 0 : i32
    %86 = tpu.memref_slice %arg5[%c1_i32_63, %c0_i32_64] : memref<8x32xf32, #tpu.memory_space<vmem>> -> memref<1x32xf32, #tpu.memory_space<vmem>>
    %87 = tpu.memref_slice %arg6[%c1_i32_60] : memref<8x!tpu.dma_semaphore, #tpu.memory_space<semaphore_mem>> -> memref<1x!tpu.dma_semaphore, #tpu.memory_space<semaphore_mem>>
    %88 = tpu.memref_squeeze %87 : memref<1x!tpu.dma_semaphore, #tpu.memory_space<semaphore_mem>> -> memref<!tpu.dma_semaphore, #tpu.memory_space<semaphore_mem>>
    tpu.wait_dma2 semaphore(%88 : memref<!tpu.dma_semaphore, #tpu.memory_space<semaphore_mem>>) src(%85 : memref<1x32xf32, #tpu.memory_space<any>>) dst(%86 : memref<1x32xf32, #tpu.memory_space<vmem>>)
    %c2_i32_65 = arith.constant 2 : i32
    %c0_i32_66 = arith.constant 0 : i32
    %c0_i32_67 = arith.constant 0 : i32
    %89 = tpu.memref_slice %arg3[%c0_i32_66, %c0_i32_67] : memref<16x32xf32, #tpu.memory_space<any>> -> memref<1x32xf32, #tpu.memory_space<any>>
    %c2_i32_68 = arith.constant 2 : i32
    %c0_i32_69 = arith.constant 0 : i32
    %90 = tpu.memref_slice %arg5[%c2_i32_68, %c0_i32_69] : memref<8x32xf32, #tpu.memory_space<vmem>> -> memref<1x32xf32, #tpu.memory_space<vmem>>
    %91 = tpu.memref_slice %arg6[%c2_i32_65] : memref<8x!tpu.dma_semaphore, #tpu.memory_space<semaphore_mem>> -> memref<1x!tpu.dma_semaphore, #tpu.memory_space<semaphore_mem>>
    %92 = tpu.memref_squeeze %91 : memref<1x!tpu.dma_semaphore, #tpu.memory_space<semaphore_mem>> -> memref<!tpu.dma_semaphore, #tpu.memory_space<semaphore_mem>>
    tpu.wait_dma2 semaphore(%92 : memref<!tpu.dma_semaphore, #tpu.memory_space<semaphore_mem>>) src(%89 : memref<1x32xf32, #tpu.memory_space<any>>) dst(%90 : memref<1x32xf32, #tpu.memory_space<vmem>>)
    %c3_i32_70 = arith.constant 3 : i32
    %c0_i32_71 = arith.constant 0 : i32
    %c0_i32_72 = arith.constant 0 : i32
    %93 = tpu.memref_slice %arg3[%c0_i32_71, %c0_i32_72] : memref<16x32xf32, #tpu.memory_space<any>> -> memref<1x32xf32, #tpu.memory_space<any>>
    %c3_i32_73 = arith.constant 3 : i32
    %c0_i32_74 = arith.constant 0 : i32
    %94 = tpu.memref_slice %arg5[%c3_i32_73, %c0_i32_74] : memref<8x32xf32, #tpu.memory_space<vmem>> -> memref<1x32xf32, #tpu.memory_space<vmem>>
    %95 = tpu.memref_slice %arg6[%c3_i32_70] : memref<8x!tpu.dma_semaphore, #tpu.memory_space<semaphore_mem>> -> memref<1x!tpu.dma_semaphore, #tpu.memory_space<semaphore_mem>>
    %96 = tpu.memref_squeeze %95 : memref<1x!tpu.dma_semaphore, #tpu.memory_space<semaphore_mem>> -> memref<!tpu.dma_semaphore, #tpu.memory_space<semaphore_mem>>
    tpu.wait_dma2 semaphore(%96 : memref<!tpu.dma_semaphore, #tpu.memory_space<semaphore_mem>>) src(%93 : memref<1x32xf32, #tpu.memory_space<any>>) dst(%94 : memref<1x32xf32, #tpu.memory_space<vmem>>)
    %c4_i32_75 = arith.constant 4 : i32
    %c0_i32_76 = arith.constant 0 : i32
    %c0_i32_77 = arith.constant 0 : i32
    %97 = tpu.memref_slice %arg3[%c0_i32_76, %c0_i32_77] : memref<16x32xf32, #tpu.memory_space<any>> -> memref<1x32xf32, #tpu.memory_space<any>>
    %c4_i32_78 = arith.constant 4 : i32
    %c0_i32_79 = arith.constant 0 : i32
    %98 = tpu.memref_slice %arg5[%c4_i32_78, %c0_i32_79] : memref<8x32xf32, #tpu.memory_space<vmem>> -> memref<1x32xf32, #tpu.memory_space<vmem>>
    %99 = tpu.memref_slice %arg6[%c4_i32_75] : memref<8x!tpu.dma_semaphore, #tpu.memory_space<semaphore_mem>> -> memref<1x!tpu.dma_semaphore, #tpu.memory_space<semaphore_mem>>
    %100 = tpu.memref_squeeze %99 : memref<1x!tpu.dma_semaphore, #tpu.memory_space<semaphore_mem>> -> memref<!tpu.dma_semaphore, #tpu.memory_space<semaphore_mem>>
    tpu.wait_dma2 semaphore(%100 : memref<!tpu.dma_semaphore, #tpu.memory_space<semaphore_mem>>) src(%97 : memref<1x32xf32, #tpu.memory_space<any>>) dst(%98 : memref<1x32xf32, #tpu.memory_space<vmem>>)
    %c5_i32_80 = arith.constant 5 : i32
    %c0_i32_81 = arith.constant 0 : i32
    %c0_i32_82 = arith.constant 0 : i32
    %101 = tpu.memref_slice %arg3[%c0_i32_81, %c0_i32_82] : memref<16x32xf32, #tpu.memory_space<any>> -> memref<1x32xf32, #tpu.memory_space<any>>
    %c5_i32_83 = arith.constant 5 : i32
    %c0_i32_84 = arith.constant 0 : i32
    %102 = tpu.memref_slice %arg5[%c5_i32_83, %c0_i32_84] : memref<8x32xf32, #tpu.memory_space<vmem>> -> memref<1x32xf32, #tpu.memory_space<vmem>>
    %103 = tpu.memref_slice %arg6[%c5_i32_80] : memref<8x!tpu.dma_semaphore, #tpu.memory_space<semaphore_mem>> -> memref<1x!tpu.dma_semaphore, #tpu.memory_space<semaphore_mem>>
    %104 = tpu.memref_squeeze %103 : memref<1x!tpu.dma_semaphore, #tpu.memory_space<semaphore_mem>> -> memref<!tpu.dma_semaphore, #tpu.memory_space<semaphore_mem>>
    tpu.wait_dma2 semaphore(%104 : memref<!tpu.dma_semaphore, #tpu.memory_space<semaphore_mem>>) src(%101 : memref<1x32xf32, #tpu.memory_space<any>>) dst(%102 : memref<1x32xf32, #tpu.memory_space<vmem>>)
    %c6_i32_85 = arith.constant 6 : i32
    %c0_i32_86 = arith.constant 0 : i32
    %c0_i32_87 = arith.constant 0 : i32
    %105 = tpu.memref_slice %arg3[%c0_i32_86, %c0_i32_87] : memref<16x32xf32, #tpu.memory_space<any>> -> memref<1x32xf32, #tpu.memory_space<any>>
    %c6_i32_88 = arith.constant 6 : i32
    %c0_i32_89 = arith.constant 0 : i32
    %106 = tpu.memref_slice %arg5[%c6_i32_88, %c0_i32_89] : memref<8x32xf32, #tpu.memory_space<vmem>> -> memref<1x32xf32, #tpu.memory_space<vmem>>
    %107 = tpu.memref_slice %arg6[%c6_i32_85] : memref<8x!tpu.dma_semaphore, #tpu.memory_space<semaphore_mem>> -> memref<1x!tpu.dma_semaphore, #tpu.memory_space<semaphore_mem>>
    %108 = tpu.memref_squeeze %107 : memref<1x!tpu.dma_semaphore, #tpu.memory_space<semaphore_mem>> -> memref<!tpu.dma_semaphore, #tpu.memory_space<semaphore_mem>>
    tpu.wait_dma2 semaphore(%108 : memref<!tpu.dma_semaphore, #tpu.memory_space<semaphore_mem>>) src(%105 : memref<1x32xf32, #tpu.memory_space<any>>) dst(%106 : memref<1x32xf32, #tpu.memory_space<vmem>>)
    %c7_i32_90 = arith.constant 7 : i32
    %c0_i32_91 = arith.constant 0 : i32
    %c0_i32_92 = arith.constant 0 : i32
    %109 = tpu.memref_slice %arg3[%c0_i32_91, %c0_i32_92] : memref<16x32xf32, #tpu.memory_space<any>> -> memref<1x32xf32, #tpu.memory_space<any>>
    %c7_i32_93 = arith.constant 7 : i32
    %c0_i32_94 = arith.constant 0 : i32
    %110 = tpu.memref_slice %arg5[%c7_i32_93, %c0_i32_94] : memref<8x32xf32, #tpu.memory_space<vmem>> -> memref<1x32xf32, #tpu.memory_space<vmem>>
    %111 = tpu.memref_slice %arg6[%c7_i32_90] : memref<8x!tpu.dma_semaphore, #tpu.memory_space<semaphore_mem>> -> memref<1x!tpu.dma_semaphore, #tpu.memory_space<semaphore_mem>>
    %112 = tpu.memref_squeeze %111 : memref<1x!tpu.dma_semaphore, #tpu.memory_space<semaphore_mem>> -> memref<!tpu.dma_semaphore, #tpu.memory_space<semaphore_mem>>
    tpu.wait_dma2 semaphore(%112 : memref<!tpu.dma_semaphore, #tpu.memory_space<semaphore_mem>>) src(%109 : memref<1x32xf32, #tpu.memory_space<any>>) dst(%110 : memref<1x32xf32, #tpu.memory_space<vmem>>)
    %c0 = arith.constant 0 : index
    %c0_95 = arith.constant 0 : index
    %113 = vector.load %arg2[%c0, %c0_95] : memref<8x1xi32, #tpu.memory_space<vmem>>, vector<8x1xi32>
    %c0_i32_96 = arith.constant 0 : i32
    %114 = vector.broadcast %c0_i32_96 : i32 to vector<8x1xi32>
    %115 = arith.subi %113, %114 : vector<8x1xi32>
    %c0_i32_97 = arith.constant 0 : i32
    %116 = vector.broadcast %c0_i32_97 : i32 to vector<8x1xi32>
    %117 = arith.cmpi sge, %115, %116 : vector<8x1xi32>
    %c16_i32 = arith.constant 16 : i32
    %118 = vector.broadcast %c16_i32 : i32 to vector<8x1xi32>
    %119 = arith.cmpi slt, %115, %118 : vector<8x1xi32>
    %120 = arith.andi %117, %119 : vector<8x1xi1>
    %c0_98 = arith.constant 0 : index
    %c0_99 = arith.constant 0 : index
    %121 = vector.load %arg5[%c0_98, %c0_99] : memref<8x32xf32, #tpu.memory_space<vmem>>, vector<8x32xf32>
    %c0_i32_100 = arith.constant 0 : i32
    %122 = arith.sitofp %c0_i32_100 : i32 to f32
    %123 = vector.shape_cast %120 : vector<8x1xi1> to vector<8x1xi1>
    %124 = vector.broadcast %123 : vector<8x1xi1> to vector<8x32xi1>
    %125 = vector.broadcast %122 : f32 to vector<8x32xf32>
    %126 = arith.select %124, %121, %125 : vector<8x32xi1>, vector<8x32xf32>
    %c0_101 = arith.constant 0 : index
    %c0_102 = arith.constant 0 : index
    %127 = vector.load %arg4[%c0_101, %c0_102] : memref<8x32xf32, #tpu.memory_space<vmem>>, vector<8x32xf32>
    tpu.vector_store %arg4[%c0_101, %c0_102], %126 {strides = array<i32>} : memref<8x32xf32, #tpu.memory_space<vmem>>, vector<8x32xf32>,
    return
  }
  func.func @transform_0(%arg0: i32, %arg1: memref<16xi32, #tpu.memory_space<smem>>) -> (i32, i32) {
    %c0_i32 = arith.constant 0 : i32
    %c0_i32_0 = arith.constant 0 : i32
    return %arg0, %c0_i32 : i32, i32
  }
  func.func @transform_2(%arg0: i32, %arg1: memref<16xi32, #tpu.memory_space<smem>>) -> (i32, i32) {
    %c0_i32 = arith.constant 0 : i32
    %c0_i32_0 = arith.constant 0 : i32
    return %arg0, %c0_i32 : i32, i32
  }
}

</mosaic_0001>

<bundles_post_ra>
// kernel: tpu_custom_call.1
= control target key start
LH: loop header
LB: loop body
LE: loop exit
PB: predicated region body
PF: predicated region fallthrough
CT: control target
= control target key end

     0   :  { %s1181_s0 = inlined_call_operand.vmem [shape: s32[16], index: 0, kind: input, shape index: {}]   ;;  %s1182_s1 = inlined_call_operand.vmem [shape: s32[16,1], index: 1, kind: input, shape index: {}]   ;;  %s1183_s2 = inlined_call_operand.vmem [shape: f32[16,32], index: 2, kind: input, shape index: {}]   ;;  %s1184_s3 = inlined_call_operand.hbm [shape: f32[16,32], index: 3, kind: output, shape index: {}]  }
   0x1   :  { %s8_s14 = sshll.u32 %s1181_s0, 4  ;;  %s9_s14 = int_to_ptr.vmem [resolvable:$true] %s8_s14 }
   0x2   :  { %s912_s15 = scalar_lea.vmem %s9_s14, 16  ;;  %p917_p1 = scmp.lt.s32.totalorder %s9_s14, %s9_s14 }
   0x3   :  { %p913_p0 = scmp.ne.s32.totalorder %s9_s14, %s912_s15  ;;  %p918_p2 = scmp.lt.s32.totalorder %s912_s15, %s912_s15 }
   0x5   :  { %p919_p3 = por %p918_p2, %p917_p1 }
   0x7   :  { %p920_p4 = pnand %p919_p3, %p913_p0 }
   0x9   :  { %923 = shalt.err (!%p920_p4)  }
   0xa   :  { %s1006_s16 = smov [#allocation5]  }
   0xb   :  { %11 = dma.vmem_to_smem %s9_s14, 16, %s1006_s16, [#allocation4] }
   0xc   :  { %968 = dma.done.wait [#allocation4], 16 }
   0xd   :  { %969 = vsyncadd [#allocation4], 4294967280 }
   0xe   :  { %13 = sfence }
   0xf   :  { %14 = vsyncpa [#allocation7], 0 }
  0x10   :  { %16 = vsyncpa [#allocation7 + $0x1], 0  ;;  %s1032_s17 = smov 0   ;;  %s1034_s18 = smov 0  }
  0x11   :  { %s1036_s0 = smov 0   ;;  %s1038_s19 = smov 0  }
  0x12 LB: > { %s1053_s20 = sadd.s32 4294967295, %s1004_s19   ;;  %s795_s21 = sadd.s32 4294967294, %s1004_s19   ;;  %s1004_s19 = sphi %s1038_s19, %s1190_s19   ;;  %s1000_s0 = sphi %s1036_s0, %s1189_s0   ;;  %s996_s18 = sphi %s1034_s18, %s1188_s18   ;;  %s992_s17 = sphi %s1032_s17, %s1187_s17  }
  0x13   : > { %s1057_s22 = sadd.s32 1, %s1004_s19   ;;  %s55_s23 = sadd.s32 1, %s1000_s0 }
  0x14   : > { %s52_s24 = ssub.s32 %s1004_s19, %s1057_s22  ;;  %p65_p5 = scmp.ne.s32.totalorder %s1000_s0, %s996_s18 }
  0x15   : > { %p53_p6 = scmp.eq.s32.totalorder %s52_s24, 0  ;;  %p66_p7 = scmp.eq.s32.totalorder %s1053_s20, 1 }
  0x16   : > { %p71_p8 = scmp.ne.s32.totalorder %s996_s18, %s992_s17  ;;  %p72_p9 = scmp.eq.s32.totalorder %s795_s21, 1 }
  0x17   : > { %s1068_s25 = scalar_select %p53_p6, %s1000_s0, %s55_s23  }
  0x18   : > { %p1070_p10 = por %p66_p7, %p65_p5  ;;  %p1074_p11 = por %p72_p9, %p71_p8 }
  0x19   : > { %p798_p12 = scmp.ge.s32.totalorder %s1004_s19, 1  ;;  %p97_p13 = scmp.lt.s32.totalorder %s1004_s19, 3 }
  0x1b   : > { %p98_p0 = pnand %p798_p12, %p97_p13 }
  0x1c   : > { %s113_s28 = sand.u32 (!%p98_p0), 1, %s996_s18   ;;  %p116_p1 = scmp.lt.s32.totalorder (!%p98_p0), %s1053_s20, 1 }
  0x1d   : > { %101 = sbr.rel (%p98_p0) target bundleno = 306 (0x132), region = 24  ;;  %s1084_s29 = sshll.u32 (!%p98_p0), %s113_s28, 3 }
  0x1e   : > { %s1087_s30 = sshll.u32 (!%p98_p0), %s1053_s20, 3  ;;  %s115_s13 = scalar_lea.vmem (!%p98_p0), [#allocation6], %s1084_s29 }
  0x1f   : > { %s121_s4 = sld [smem:[#allocation5 + %s1087_s30]] (!%p98_p0) }
  0x24   : > { %s117_s5 = scalar_select %p116_p1, %s1053_s20, 1 }
  0x25   : > { %p122_p2 = scmp.gt.s32.totalorder %s121_s4, 0  ;;  %p802_p3 = scmp.lt.s32.totalorder %s121_s4, 15 }
  0x26   : > { %s800_s6 = sshll.u32 %s117_s5, 3 }
  0x27   : > { %s1094_s9 = scalar_lea.vmem %s1182_s1, %s800_s6  ;;  %s1192_s4 = smov (!%p122_p2, %s121_s4), 0 }
  0x28   : > { %s1194_s4 = smov (!%p802_p3, %s1192_s4), 15 }
  0x29   : > { %s126_s12 = scalar_lea.vmem %s1183_s2, %s1194_s4 }
  0x2a   : > { %v144_v0 = vld [vmem:[%s126_s12] sm:$0x1] }
  0x2b   : > { %145 = vst [vmem:[#allocation2] sm:$0x1] %v144_v0 }
  0x2c   : > { %170 = vsyncadd [#allocation3], 16  ;;  %s171_s14 = sadd.s32 1, %s1087_s30 }
  0x2d   : > { %s172_s15 = sld [smem:[#allocation5 + %s171_s14]] }
  0x33   : > { %p173_p4 = scmp.gt.s32.totalorder %s172_s15, 0  ;;  %p807_p5 = scmp.lt.s32.totalorder %s172_s15, 15 }
  0x35   : > { %s1196_s15 = smov (!%p173_p4, %s172_s15), 0 }
  0x36   : > { %s1198_s15 = smov (!%p807_p5, %s1196_s15), 15 }
  0x37   : > { %s177_s23 = scalar_lea.vmem %s1183_s2, %s1198_s15 }
  0x38   : > { %v197_v1 = vld [vmem:[%s177_s23] sm:$0x1] }
  0x39   : > { %198 = vst [vmem:[#allocation2 + $0x1] sm:$0x1] %v197_v1 }
  0x3a   : > { %223 = vsyncadd [#allocation3 + $0x1], 16  ;;  %s224_s24 = sadd.s32 2, %s1087_s30 }
  0x3b   : > { %s225_s4 = sld [smem:[#allocation5 + %s224_s24]] }
  0x41   : > { %p226_p6 = scmp.gt.s32.totalorder %s225_s4, 0  ;;  %p812_p7 = scmp.lt.s32.totalorder %s225_s4, 15 }
  0x43   : > { %s1200_s4 = smov (!%p226_p6, %s225_s4), 0 }
  0x44   : > { %s1202_s4 = smov (!%p812_p7, %s1200_s4), 15 }
  0x45   : > { %s230_s7 = scalar_lea.vmem %s1183_s2, %s1202_s4 }
  0x46   : > { %v250_v2 = vld [vmem:[%s230_s7] sm:$0x1] }
  0x47   : > { %251 = vst [vmem:[#allocation2 + $0x2] sm:$0x1] %v250_v2 }
  0x48   : > { %276 = vsyncadd [#allocation3 + $0x2], 16  ;;  %s277_s8 = sadd.s32 3, %s1087_s30 }
  0x49   : > { %s278_s10 = sld [smem:[#allocation5 + %s277_s8]] }
  0x4f   : > { %p279_p8 = scmp.gt.s32.totalorder %s278_s10, 0  ;;  %p817_p9 = scmp.lt.s32.totalorder %s278_s10, 15 }
  0x51   : > { %s1204_s10 = smov (!%p279_p8, %s278_s10), 0 }
  0x52   : > { %s1206_s10 = smov (!%p817_p9, %s1204_s10), 15 }
  0x53   : > { %s283_s14 = scalar_lea.vmem %s1183_s2, %s1206_s10 }
  0x54   : > { %v303_v3 = vld [vmem:[%s283_s14] sm:$0x1] }
  0x55   : > { %304 = vst [vmem:[#allocation2 + $0x3] sm:$0x1] %v303_v3 }
  0x56   : > { %329 = vsyncadd [#allocation3 + $0x3], 16  ;;  %s330_s15 = sadd.s32 4, %s1087_s30 }
  0x57   : > { %s331_s16 = sld [smem:[#allocation5 + %s330_s15]] }
  0x5d   : > { %p332_p12 = scmp.gt.s32.totalorder %s331_s16, 0  ;;  %p822_p13 = scmp.lt.s32.totalorder %s331_s16, 15 }
  0x5f   : > { %s1208_s16 = smov (!%p332_p12, %s331_s16), 0 }
  0x60   : > { %s1210_s16 = smov (!%p822_p13, %s1208_s16), 15 }
  0x61   : > { %s336_s24 = scalar_lea.vmem %s1183_s2, %s1210_s16 }
  0x62   : > { %v356_v4 = vld [vmem:[%s336_s24] sm:$0x1] }
  0x63   : > { %357 = vst [vmem:[#allocation2 + $0x4] sm:$0x1] %v356_v4 }
  0x64   : > { %382 = vsyncadd [#allocation3 + $0x4], 16  ;;  %s383_s4 = sadd.s32 5, %s1087_s30 }
  0x65   : > { %s384_s5 = sld [smem:[#allocation5 + %s383_s4]] }
  0x6b   : > { %p385_p0 = scmp.gt.s32.totalorder %s384_s5, 0  ;;  %p827_p1 = scmp.lt.s32.totalorder %s384_s5, 15 }
  0x6d   : > { %s1212_s5 = smov (!%p385_p0, %s384_s5), 0 }
  0x6e   : > { %s1214_s5 = smov (!%p827_p1, %s1212_s5), 15 }
  0x6f   : > { %s389_s8 = scalar_lea.vmem %s1183_s2, %s1214_s5 }
  0x70   : > { %v409_v5 = vld [vmem:[%s389_s8] sm:$0x1] }
  0x71   : > { %410 = vst [vmem:[#allocation2 + $0x5] sm:$0x1] %v409_v5 }
  0x72   : > { %435 = vsyncadd [#allocation3 + $0x5], 16  ;;  %s436_s10 = sadd.s32 6, %s1087_s30 }
  0x73   : > { %s437_s11 = sld [smem:[#allocation5 + %s436_s10]] }
  0x79   : > { %p438_p2 = scmp.gt.s32.totalorder %s437_s11, 0  ;;  %p832_p3 = scmp.lt.s32.totalorder %s437_s11, 15 }
  0x7b   : > { %s1216_s11 = smov (!%p438_p2, %s437_s11), 0 }
  0x7c   : > { %s1218_s11 = smov (!%p832_p3, %s1216_s11), 15 }
  0x7d   : > { %s442_s15 = scalar_lea.vmem %s1183_s2, %s1218_s11 }
  0x7e   : > { %v462_v6 = vld [vmem:[%s442_s15] sm:$0x1] }
  0x7f   : > { %463 = vst [vmem:[#allocation2 + $0x6] sm:$0x1] %v462_v6 }
  0x80   : > { %488 = vsyncadd [#allocation3 + $0x6], 16  ;;  %s489_s16 = sadd.s32 7, %s1087_s30 }
  0x81   : > { %s490_s21 = sld [smem:[#allocation5 + %s489_s16]] }
  0x87   : > { %p491_p4 = scmp.gt.s32.totalorder %s490_s21, 0  ;;  %p837_p5 = scmp.lt.s32.totalorder %s490_s21, 15 }
  0x89   : > { %s1220_s21 = smov (!%p491_p4, %s490_s21), 0 }
  0x8a   : > { %s1222_s21 = smov (!%p837_p5, %s1220_s21), 15 }
  0x8b   : > { %s495_s4 = scalar_lea.vmem %s1183_s2, %s1222_s21 }
  0x8c   : > { %v515_v7 = vld [vmem:[%s495_s4] sm:$0x1] }
  0x8d   : > { %516 = vst [vmem:[#allocation2 + $0x7] sm:$0x1] %v515_v7 }
  0x8e   : > { %541 = vsyncadd [#allocation3 + $0x7], 16 }
  0x8f   : > { %970 = dma.done.wait [#allocation3], 16 }
  0x90   : > { %971 = vsyncadd [#allocation3], 4294967280 }
  0x91   : > { %972 = dma.done.wait [#allocation3 + $0x1], 16 }
  0x92   : > { %973 = vsyncadd [#allocation3 + $0x1], 4294967280 }
  0x93   : > { %974 = dma.done.wait [#allocation3 + $0x2], 16 }
  0x94   : > { %975 = vsyncadd [#allocation3 + $0x2], 4294967280 }
  0x95   : > { %976 = dma.done.wait [#allocation3 + $0x3], 16 }
  0x96   : > { %977 = vsyncadd [#allocation3 + $0x3], 4294967280 }
  0x97   : > { %978 = dma.done.wait [#allocation3 + $0x4], 16 }
  0x98   : > { %979 = vsyncadd [#allocation3 + $0x4], 4294967280 }
  0x99   : > { %980 = dma.done.wait [#allocation3 + $0x5], 16 }
  0x9a   : > { %981 = vsyncadd [#allocation3 + $0x5], 4294967280 }
  0x9b   : > { %982 = dma.done.wait [#allocation3 + $0x6], 16 }
  0x9c   : > { %983 = vsyncadd [#allocation3 + $0x6], 4294967280 }
  0x9d   : > { %984 = dma.done.wait [#allocation3 + $0x7], 16 }
  0x9e   : > { %985 = vsyncadd [#allocation3 + $0x7], 4294967280  ;;  %v1007_v8 = vmov 0   ;;  %v559_v9 = vld [vmem:[%s1094_s9] sm:$0xff]  ;;  %s843_s30 = sshll.u32 %s1053_s20, 7  ;;  %s586_s5 = sshll.u32 %s115_s13, 4  ;;  %s1137_s5 = int_to_ptr.vmem [resolvable:$true] %s586_s5 }
  0x9f   : > { %911 = vset.pattern.permute.xlu0 %v1007_v8  ;;  %vm560_vm0 = vcmp.ge.s32.totalorder %v559_v9, 0  ;;  %vm561_vm1 = vcmp.lt.s32.totalorder %v559_v9, 16  ;;  %v563_v11 = vld [vmem:[#allocation2] sm:$0xff]  ;;  %vm570_vm3 = vcmask 261120   ;;  %s1135_s8 = scalar_lea.hbm %s1184_s3, %s843_s30  ;;  %s573_s20 = scalar_lea.sflag [#allocation7], %s113_s28 }
  0xa0   : > { %vm562_vm2 = vmand %vm560_vm0, %vm561_vm1  ;;  %s924_s9 = scalar_lea.vmem %s1137_s5, 128  ;;  %s1008_s10 = smov [#allocation6]  }
  0xa1   : > { %v564_v10 = vsel %vm562_vm2, 1, %v1007_v8  ;;  %p925_p6 = scmp.ne.s32.totalorder %s1137_s5, %s924_s9  ;;  %s928_s11 = sshll.u32 %s1008_s10, 4  ;;  %s929_s11 = int_to_ptr.vmem [resolvable:$false] %s928_s11 }
  0xa2   : > { %566 = vperm.xlu0 %911, %v564_v10   ;;  %s930_s12 = scalar_lea.vmem %s929_s11, 256  ;;  %p931_p9 = scmp.lt.s32.totalorder %s1137_s5, %s929_s11 }
  0xa3   : > { %p926_p7 = pnand %p925_p6, %p1070_p10  ;;  %p932_p12 = scmp.lt.s32.totalorder %s930_s12, %s924_s9 }
  0xa5   : > { %p927_p8 = pneg %p926_p7  ;;  %p933_p13 = por %p932_p12, %p931_p9 }
  0xa7   : > { %p934_p0 = pnand %p933_p13, %p927_p8 }
 0x121   : > { %v567_v12 = vpop.permute.xlu0 %566 }
 0x122   : > { %vm568_vm4 = vcmp.eq.s32.totalorder %v567_v12, 1 }
 0x123   : > { %v569_v13 = vsel %vm568_vm4, %v563_v11, 0.0 }
 0x124   : > { %571 = vst.msk [vmem:[%s115_s13] sm:$0xff] %vm570_vm3, %v569_v13 }
 0x125   : > { %937 = shalt.err (!%p934_p0)
}
 0x126   : > { %s938_s28 = scalar_lea.hbm %s1135_s8, 128  ;;  %s942_s14 = scalar_lea.hbm %s1184_s3, 256 }
 0x127   : > { %p939_p1 = scmp.ne.s32.totalorder %s1135_s8, %s938_s28  ;;  %p943_p4 = scmp.lt.u32.totalorder %s1135_s8, %s1184_s3 }
 0x128   : > { %p944_p5 = scmp.lt.u32.totalorder %s942_s14, %s938_s28  ;;  %p946_p7 = scmp.lt.u32.totalorder %s938_s28, %s1135_s8 }
 0x129   : > { %p940_p2 = pnand %p939_p1, %p1070_p10 }
 0x12a   : > { %p945_p6 = por %p944_p5, %p943_p4 }
 0x12b   : > { %p941_p3 = pneg %p940_p2 }
 0x12c   : > { %p947_p8 = por %p946_p7, %p945_p6 }
 0x12e   : > { %p948_p9 = pnand %p947_p8, %p941_p3 }
 0x130   : > { %951 = shalt.err (!%p948_p9)
}
 0x131   : > { %870 = dma.vmem_to_hbm [thread:$0]  (%p1070_p10), %s1137_s5, 128, %s1135_s8, %s573_s20  }
 0x132 PF: > { %p876_p12 = scmp.ge.s32.totalorder %s1004_s19, 2  ;;  %s598_s21 = sand.u32 1, %s992_s17  }
 0x133   : > { %s599_s23 = scalar_lea.sflag [#allocation7], %s598_s21 }
 0x134   : > { %p873_p13 = pnand %p876_p12, %p1074_p11 }
 0x136   : > { %987 = dma.done.wait (!%p873_p13), %s599_s23, 128  }
 0x137   : > { %989 = vsyncadd (!%p873_p13), %s599_s23, 4294967168  ;;  %p19_p0 = scmp.ge.s32.totalorder %s1057_s22, 4   ;;  %s1187_s17 = smov %s996_s18 }
 0x138   : > { %s1188_s18 = smov %s1000_s0  ;;  %s1189_s0 = smov %s1068_s25 }
 0x139   : > { %s1190_s19 = smov %s1057_s22  ;;  %21 = sbr.rel (!%p19_p0) target bundleno = 18 (0x12), region = 408 }
 0x140   :  { %604 = vsyncpa [#allocation7], 1 }
 0x141   :  { %606 = vsyncpa [#allocation7 + $0x1], 1 }
 0x142   :  { %607 = vsyncmov [#allocation3] }
 0x145   :  { %s608_s19 = vpop.sfrf %607 }
 0x146   :  { %p846_p10 = scmp.ne.s32.totalorder %s608_s19, 0 }
 0x148   :  { %612 = shalt.err (%p846_p10)  }
 0x149   :  { %614 = vsyncmov [#allocation3 + $0x1] }
 0x14c   :  { %s615_s26 = vpop.sfrf %614 }
 0x14d   :  { %p847_p11 = scmp.ne.s32.totalorder %s615_s26, 0 }
 0x14f   :  { %619 = shalt.err (%p847_p11)  }
 0x150   :  { %621 = vsyncmov [#allocation3 + $0x2] }
 0x153   :  { %s622_s27 = vpop.sfrf %621 }
 0x154   :  { %p848_p1 = scmp.ne.s32.totalorder %s622_s27, 0 }
 0x156   :  { %626 = shalt.err (%p848_p1)  }
 0x157   :  { %628 = vsyncmov [#allocation3 + $0x3] }
 0x15a   :  { %s629_s24 = vpop.sfrf %628 }
 0x15b   :  { %p849_p2 = scmp.ne.s32.totalorder %s629_s24, 0 }
 0x15d   :  { %633 = shalt.err (%p849_p2)  }
 0x15e   :  { %635 = vsyncmov [#allocation3 + $0x4] }
 0x161   :  { %s636_s22 = vpop.sfrf %635 }
 0x162   :  { %p850_p3 = scmp.ne.s32.totalorder %s636_s22, 0 }
 0x164   :  { %640 = shalt.err (%p850_p3)  }
 0x165   :  { %642 = vsyncmov [#allocation3 + $0x5] }
 0x168   :  { %s643_s1 = vpop.sfrf %642 }
 0x169   :  { %p851_p4 = scmp.ne.s32.totalorder %s643_s1, 0 }
 0x16b   :  { %647 = shalt.err (%p851_p4)  }
 0x16c   :  { %649 = vsyncmov [#allocation3 + $0x6] }
 0x16f   :  { %s650_s2 = vpop.sfrf %649 }
 0x170   :  { %p852_p5 = scmp.ne.s32.totalorder %s650_s2, 0 }
 0x172   :  { %654 = shalt.err (%p852_p5)  }
 0x173   :  { %656 = vsyncmov [#allocation3 + $0x7] }
 0x176   :  { %s657_s3 = vpop.sfrf %656 }
 0x177   :  { %p853_p6 = scmp.ne.s32.totalorder %s657_s3, 0 }
 0x179   :  { %661 = shalt.err (%p853_p6)  }

</bundles_post_ra>
